<compile_context>
chip_gen: v5e
topology: v5e:2x2
jax: 0.10.0
libtpu: 0.0.40
codegen_flags: <defaults>
</compile_context>

<pallas_src>
import jax
import jax.numpy as jnp
from jax.experimental import pallas as pl
from jax.experimental.pallas import tpu as pltpu

# Module hyperparameters (from the PyTorch script)
INPUT_DIM = 1
HIDDEN_DIM = 1
OUTPUT_DIM = 1

LANES = 128                      # vreg lane width (last dim)
DEFAULT_MAX_BLOCK_ROWS = 8192    # 8192*128*4B = 4 MiB per f32 buffer
DEFAULT_MIN_KERNEL_ELEMS = 65536 # below this (256 KiB f32) use the fused XLA fallback


def _round_up(a, b):
    return -(-a // b) * b


def _cdiv(a, b):
    return -(-a // b)


def _sublane_multiple(dtype):
    # Min tile is (8,128) for 4-byte, (16,128) for 2-byte, (32,128) for 1-byte dtypes.
    return 32 // jnp.dtype(dtype).itemsize


def mlp_kernel(params_ref, x_ref, o_ref):
    # params_ref: (4,) f32 in SMEM -> [w1, b1, w2, b2] scalars.
    w1 = params_ref[0]
    b1 = params_ref[1]
    w2 = params_ref[2]
    b2 = params_ref[3]
    x = x_ref[...].astype(jnp.float32)               # native-dtype DMA, f32 math (VPU)
    h = jnp.maximum(x * w1 + b1, 0.0)                # Linear(1->1) + ReLU
    o_ref[...] = (h * w2 + b2).astype(o_ref.dtype)   # Linear(1->1), store in caller dtype


def nonlinear_regression_forward(x, w1, b1, w2, b2, *,
                                 max_block_rows=DEFAULT_MAX_BLOCK_ROWS,
                                 min_kernel_elems=DEFAULT_MIN_KERNEL_ELEMS):
    """x: (B, input_dim); w1: (hidden, input), b1: (hidden,), w2: (output, hidden),
    b2: (output,) in PyTorch nn.Linear layout.  Returns (B, output_dim) in x.dtype."""
    B = x.shape[0]
    dtype = x.dtype
    n = int(x.size)              # input_dim == 1, so n == B

    # Small-batch fallback: launch/pad/slice overhead exceeds one HBM pass.
    if n < min_kernel_elems:
        h = jnp.maximum(x @ w1.T + b1, 0.0)
        return (h @ w2.T + b2).astype(dtype)

    # Pack the four scalar parameters into one tiny SMEM array.
    params = jnp.concatenate([
        w1.reshape(-1), b1.reshape(-1), w2.reshape(-1), b2.reshape(-1)
    ]).astype(jnp.float32)                           # (4,)

    # Lane-dense layout: flatten, pad only to the next multiple of 128 (if needed).
    flat = x.reshape(-1)                             # native dtype, no wrapper upcast
    rows = _cdiv(n, LANES)
    padded_n = rows * LANES
    needs_pad = padded_n != n
    if needs_pad:
        flat = jnp.pad(flat, (0, padded_n - n))
    x2d = flat.reshape(rows, LANES)

    # Block rows: dtype-correct sublane multiple, big blocks, >=2 blocks when possible
    # so the parallel grid axis can be sharded across v7x's two TensorCores.
    sub = _sublane_multiple(dtype)
    mbr = max(_round_up(max_block_rows, sub), sub)
    block_rows = max(min(mbr, _round_up(_cdiv(rows, 2), sub)), sub)
    grid = (_cdiv(rows, block_rows),)                # ragged last block handled by Pallas

    itemsize = jnp.dtype(dtype).itemsize
    cost = pl.CostEstimate(flops=5 * padded_n,       # 2 mul + 2 add + 1 max per element
                           transcendentals=0,
                           bytes_accessed=2 * padded_n * itemsize)

    out2d = pl.pallas_call(
        mlp_kernel,
        out_shape=jax.ShapeDtypeStruct((rows, LANES), dtype),
        grid=grid,
        in_specs=[
            pl.BlockSpec(memory_space=pltpu.MemorySpace.SMEM),    # (4,) param scalars
            pl.BlockSpec((block_rows, LANES), lambda i: (i, 0)),  # lane-dense input slab
        ],
        out_specs=pl.BlockSpec((block_rows, LANES), lambda i: (i, 0)),
        compiler_params=pltpu.CompilerParams(
            dimension_semantics=("parallel",),
            vmem_limit_bytes=32 * 1024 * 1024,       # headroom on v5e's 16 MiB default
        ),
        cost_estimate=cost,
    )(params, x2d)

    out_flat = out2d.reshape(-1)
    if needs_pad:
        out_flat = out_flat[:n]                      # strip lane padding (only if padded)
    return out_flat.reshape(B, OUTPUT_DIM)


if __name__ == "__main__":
    key = jax.random.PRNGKey(0)
    k_x, k_w1, k_b1, k_w2, k_b2 = jax.random.split(key, 5)

    # Deterministic parameter init (synthetic; PyTorch-like uniform range).
    w1 = jax.random.uniform(k_w1, (HIDDEN_DIM, INPUT_DIM), jnp.float32, -1.0, 1.0)
    b1 = jax.random.uniform(k_b1, (HIDDEN_DIM,), jnp.float32, -1.0, 1.0)
    w2 = jax.random.uniform(k_w2, (OUTPUT_DIM, HIDDEN_DIM), jnp.float32, -1.0, 1.0)
    b2 = jax.random.uniform(k_b2, (OUTPUT_DIM,), jnp.float32, -1.0, 1.0)

    def ref_fwd(xx):
        return jnp.maximum(xx.astype(jnp.float32) @ w1.T + b1, 0.0) @ w2.T + b2

    # Case 1: tiny batch (the PyTorch demo scale) -> fused pure-XLA fallback path.
    x_small = jax.random.normal(k_x, (8, INPUT_DIM), dtype=jnp.float32)
    out_small = jax.block_until_ready(
        nonlinear_regression_forward(x_small, w1, b1, w2, b2))
    assert out_small.shape == (8, OUTPUT_DIM)
    assert jnp.allclose(out_small, ref_fwd(x_small), atol=1e-5, rtol=1e-5)

    # Case 2: lane-aligned batch (multiple of 128) -> pad-free kernel path, 2 grid blocks.
    x_mid = jax.random.normal(jax.random.fold_in(k_x, 1), (4096, INPUT_DIM),
                              dtype=jnp.float32)
    out_mid = jax.block_until_ready(
        nonlinear_regression_forward(x_mid, w1, b1, w2, b2, min_kernel_elems=0))
    assert out_mid.shape == (4096, OUTPUT_DIM)
    assert jnp.allclose(out_mid, ref_fwd(x_mid), atol=1e-5, rtol=1e-5)

    # Case 3: ragged batch (not a multiple of 128) -> kernel path with minimal pad+slice.
    x_rag = jax.random.normal(jax.random.fold_in(k_x, 2), (3000, INPUT_DIM),
                              dtype=jnp.float32)
    out_rag = jax.block_until_ready(
        nonlinear_regression_forward(x_rag, w1, b1, w2, b2, min_kernel_elems=0))
    assert out_rag.shape == (3000, OUTPUT_DIM)
    assert jnp.allclose(out_rag, ref_fwd(x_rag), atol=1e-5, rtol=1e-5)

    # Case 4: bf16 input -> native-dtype DMA in/out, f32 math in-kernel, (16,128) tiles.
    x_bf16 = jax.random.normal(jax.random.fold_in(k_x, 3), (2048, INPUT_DIM),
                               dtype=jnp.bfloat16)
    out_bf16 = jax.block_until_ready(
        nonlinear_regression_forward(x_bf16, w1, b1, w2, b2, min_kernel_elems=0))
    assert out_bf16.shape == (2048, OUTPUT_DIM)
    assert out_bf16.dtype == jnp.bfloat16
    assert jnp.allclose(out_bf16.astype(jnp.float32), ref_fwd(x_bf16),
                        atol=5e-2, rtol=5e-2)

    print("KERNEL_OK")
</pallas_src>

<mosaic_0001>
module attributes {stable_mosaic.version = 11 : i64} {
  func.func @mlp_kernel(%arg0: i32, %arg1: memref<4xf32, #tpu.memory_space<smem>>, %arg2: memref<16x128xf32, #tpu.memory_space<vmem>>, %arg3: memref<16x128xf32, #tpu.memory_space<vmem>>) attributes {dimension_semantics = [#tpu.dimension_semantics<parallel>], iteration_bounds = array<i64: 2>, scalar_prefetch = 0 : i64, scratch_operands = 0 : i64, tpu.core_type = #tpu.core_type<tc>, window_params = [{transform_indices = @transform_0, window_bounds = array<i64: 4>}, {transform_indices = @transform_1, window_bounds = array<i64: 16, 128>}, {transform_indices = @transform_2, window_bounds = array<i64: 16, 128>}]} {
    %c0 = arith.constant 0 : index
    %0 = memref.load %arg1[%c0] : memref<4xf32, #tpu.memory_space<smem>>
    %c1 = arith.constant 1 : index
    %1 = memref.load %arg1[%c1] : memref<4xf32, #tpu.memory_space<smem>>
    %c2 = arith.constant 2 : index
    %2 = memref.load %arg1[%c2] : memref<4xf32, #tpu.memory_space<smem>>
    %c3 = arith.constant 3 : index
    %3 = memref.load %arg1[%c3] : memref<4xf32, #tpu.memory_space<smem>>
    %c0_0 = arith.constant 0 : index
    %c0_1 = arith.constant 0 : index
    %4 = vector.load %arg2[%c0_0, %c0_1] : memref<16x128xf32, #tpu.memory_space<vmem>>, vector<16x128xf32>
    %5 = vector.broadcast %0 : f32 to vector<16x128xf32>
    %6 = arith.mulf %4, %5 : vector<16x128xf32>
    %7 = vector.broadcast %1 : f32 to vector<16x128xf32>
    %8 = arith.addf %6, %7 : vector<16x128xf32>
    %cst = arith.constant 0.000000e+00 : f32
    %9 = vector.broadcast %cst : f32 to vector<16x128xf32>
    %10 = arith.maximumf %8, %9 : vector<16x128xf32>
    %11 = vector.broadcast %2 : f32 to vector<16x128xf32>
    %12 = arith.mulf %10, %11 : vector<16x128xf32>
    %13 = vector.broadcast %3 : f32 to vector<16x128xf32>
    %14 = arith.addf %12, %13 : vector<16x128xf32>
    %c0_2 = arith.constant 0 : index
    %c0_3 = arith.constant 0 : index
    %15 = vector.load %arg3[%c0_2, %c0_3] : memref<16x128xf32, #tpu.memory_space<vmem>>, vector<16x128xf32>
    tpu.vector_store %arg3[%c0_2, %c0_3], %14 {strides = array<i32>} : memref<16x128xf32, #tpu.memory_space<vmem>>, vector<16x128xf32>,
    return
  }
  func.func @transform_0(%arg0: i32) -> i32 {
    %c0_i32 = arith.constant 0 : i32
    %c0_i32_0 = arith.constant 0 : i32
    return %c0_i32 : i32
  }
  func.func @transform_1(%arg0: i32) -> (i32, i32) {
    %c0_i32 = arith.constant 0 : i32
    %c0_i32_0 = arith.constant 0 : i32
    return %arg0, %c0_i32 : i32, i32
  }
  func.func @transform_2(%arg0: i32) -> (i32, i32) {
    %c0_i32 = arith.constant 0 : i32
    %c0_i32_0 = arith.constant 0 : i32
    return %arg0, %c0_i32 : i32, i32
  }
}

</mosaic_0001>

<bundles_post_ra>
// kernel: tpu_custom_call.1
= control target key start
LH: loop header
LB: loop body
LE: loop exit
PB: predicated region body
PF: predicated region fallthrough
CT: control target
= control target key end

     0   :  { %7 = vsyncpa [#allocation5], 0  ;;  %s664_s0 = inlined_call_operand.hbm [shape: f32[4], index: 0, kind: input, shape index: {}]   ;;  %s665_s1 = inlined_call_operand.hbm [shape: f32[32,128], index: 1, kind: input, shape index: {}]   ;;  %s666_s2 = inlined_call_operand.hbm [shape: f32[32,128], index: 2, kind: output, shape index: {}]  }
   0x1   :  { %8 = vsyncpa [#allocation3], 0 }
   0x2   :  { %10 = vsyncpa [#allocation3 + $0x1], 0 }
   0x3   :  { %11 = vsyncpa [#allocation4], 0 }
   0x4   :  { %13 = vsyncpa [#allocation4 + $0x1], 0  ;;  %s522_s9 = smov 0   ;;  %s524_s10 = smov 0  }
   0x5   :  { %s526_s11 = smov 0   ;;  %s528_s12 = smov 0  }
   0x6 LB: > { %s543_s13 = sadd.s32 4294967295, %s500_s12   ;;  %s303_s14 = sadd.s32 4294967294, %s500_s12   ;;  %s500_s12 = sphi %s528_s12, %s677_s12   ;;  %s496_s11 = sphi %s526_s11, %s676_s11   ;;  %s492_s10 = sphi %s524_s10, %s675_s10   ;;  %s488_s9 = sphi %s522_s9, %s674_s9  }
   0x7   : > { %s547_s15 = sadd.s32 1, %s500_s12   ;;  %s47_s16 = sadd.s32 1, %s496_s11 }
   0x8   : > { %s44_s17 = ssub.s32 %s500_s12, %s547_s15  ;;  %p54_p0 = scmp.ne.s32.totalorder %s496_s11, %s492_s10 }
   0x9   : > { %p45_p1 = scmp.eq.s32.totalorder %s44_s17, 0  ;;  %p55_p2 = scmp.eq.s32.totalorder %s500_s12, 0 }
   0xa   : > { %p60_p3 = scmp.ne.s32.totalorder %s492_s10, %s488_s9  ;;  %p61_p4 = scmp.eq.s32.totalorder %s543_s13, 0 }
   0xb   : > { %s559_s18 = scalar_select %p45_p1, %s496_s11, %s47_s16  }
   0xc   : > { %p561_p5 = por %p55_p2, %p54_p0  ;;  %p567_p6 = por %p61_p4, %p60_p3 }
   0xd   : > { %p84_p7 = scmp.eq.s32.totalorder %s543_s13, 1  ;;  %p90_p8 = scmp.eq.s32.totalorder %s303_s14, 1 }
   0xe   : > { %p304_p9 = scmp.ge.s32.totalorder %s500_s12, 1  ;;  %p97_p10 = scmp.lt.s32.totalorder %s500_s12, 3 }
   0xf   : > { %p574_p11 = por %p84_p7, %p54_p0  ;;  %p578_p12 = por %p90_p8, %p60_p3 }
  0x10   : > { %p582_p13 = pnand %p304_p9, %p97_p10  ;;  %s109_s26 = sshll.u32 %s664_s0, 4  ;;  %s110_s26 = int_to_ptr.hbm [resolvable:$true] %s109_s26 }
  0x11   : > { %p345_p2 = scmp.lt.s32.totalorder %s500_s12, 2  ;;  %s120_s27 = sand.u32 1, %s496_s11  }
  0x12   : > { %p332_p1 = pneg %p582_p13  ;;  %s307_s29 = sshll.u32 %s120_s27, 4 }
  0x13   : > { %p598_p3 = pnand %p345_p2, %p561_p5  ;;  %s502_s30 = smov [#allocation2]  }
  0x14   : > { %p333_p7 = pnand %p332_p1, %p61_p4  ;;  %s322_s3 = sshll.u32 %s500_s12, 4 }
  0x15   : > { %s124_s4 = scalar_lea.vmem [#allocation6], %s307_s29  ;;  %s129_s8 = scalar_lea.hbm %s665_s1, %s322_s3 }
  0x16   : > { %335 = dma.hbm_to_smem (!%p333_p7), %s110_s26, 16, %s502_s30, [#allocation5]  }
  0x17   : > { %s132_s5 = sshll.u32 %s124_s4, 4  ;;  %s130_s14 = sshll.u32 %s129_s8, 4  ;;  %s133_s5 = int_to_ptr.vmem [resolvable:$true] %s132_s5  ;;  %s131_s14 = int_to_ptr.hbm [resolvable:$true] %s130_s14 }
  0x18   : > { %s121_s16 = scalar_lea.sflag [#allocation3], %s120_s27  ;;  %s400_s17 = sshra.s32 %s131_s14, 4  ;;  %s401_s17 = int_to_ptr.hbm [resolvable:$true] %s400_s17 }
  0x19   : > { %s402_s19 = scalar_lea.hbm %s401_s17, 16  ;;  %p404_p8 = pneg %p598_p3 }
  0x1a   : > { %p403_p5 = scmp.ne.s32.totalorder %s401_s17, %s402_s19  ;;  %s407_s26 = scalar_lea.hbm %s665_s1, 32 }
  0x1b   : > { %p408_p1 = scmp.lt.s32.totalorder %s401_s17, %s665_s1  ;;  %p409_p2 = scmp.lt.s32.totalorder %s407_s26, %s402_s19 }
  0x1c   : > { %p405_p9 = pnand %p404_p8, %p403_p5 }
  0x1d   : > { %p410_p7 = por %p409_p2, %p408_p1 }
  0x1e   : > { %p406_p10 = pneg %p405_p9 }
  0x20   : > { %p411_p0 = pnand %p410_p7, %p406_p10 }
  0x22   : > { %414 = shalt.err (!%p411_p0)
}
  0x23   : > { %s503_s27 = smov 128   ;;  %s504_s3 = smov 8  }
  0x24   : > { %339 = dma.hbm_to_vmem [thread:$0]  (!%p598_p3), %s131_s14, 256, %s133_s5, %s121_s16, %s503_s27, %s503_s27, %s504_s3  }
  0x25   : > { %144 = sbr.rel (%p582_p13) target bundleno = 71 (0x47), region = 28 }
  0x2a   : > { %475 = dma.done.wait (%p61_p4), [#allocation5], 16  }
  0x2b   : > { %477 = vsyncadd (%p61_p4), [#allocation5], 4294967280  ;;  %s623_s4 = sand.u32 1, %s492_s10  }
  0x2c   : > { %s312_s6 = sshll.u32 %s623_s4, 4  ;;  %s152_s7 = scalar_lea.sflag [#allocation3], %s623_s4 }
  0x2d   : > { %s155_s8 = scalar_lea.vmem [#allocation6], %s312_s6 }
  0x2e   : > { %479 = dma.done.wait (%p567_p6), %s152_s7, 256  }
  0x2f   : > { %481 = vsyncadd (%p567_p6), %s152_s7, 4294967040 }
  0x30   : > { %161 = sfence }
  0x31   : > { %s180_s23 = sld [smem:[#allocation2]]  ;;  %v184_v0 = vld [vmem:[%s155_s8] sm:$0xff]  ;;  %v185_v1 = vld [vmem:[%s155_s8 + $0x8] sm:$0xff]  ;;  %s323_s16 = sshll.u32 %s543_s13, 4 }
  0x32   : > { %s314_s28 = sld [smem:[#allocation2 + $0x1]]  ;;  %s214_s20 = scalar_lea.hbm %s666_s2, %s323_s16 }
  0x33   : > { %s315_s5 = sld [smem:[#allocation2 + $0x2]]  ;;  %s177_s24 = scalar_lea.vmem [#allocation7], %s312_s6 }
  0x34   : > { %s316_s14 = sld [smem:[#allocation2 + $0x3]]  ;;  %s215_s25 = sshll.u32 %s177_s24, 4  ;;  %s216_s25 = int_to_ptr.vmem [resolvable:$true] %s215_s25 }
  0x35   : > { %s217_s26 = sshll.u32 %s214_s20, 4  ;;  %s203_s13 = scalar_lea.sflag [#allocation4], %s623_s4  ;;  %s218_s26 = int_to_ptr.hbm [resolvable:$true] %s217_s26 }
  0x36   : > { %s444_s29 = sshra.s32 %s218_s26, 4  ;;  %s450_s6 = scalar_lea.hbm %s666_s2, 32  ;;  %s445_s29 = int_to_ptr.hbm [resolvable:$true] %s444_s29 }
  0x37   : > { %v186_v2 = vstv %s180_s23  ;;  %s446_s30 = scalar_lea.hbm %s445_s29, 16  ;;  %p451_p0 = scmp.lt.s32.totalorder %s445_s29, %s666_s2 }
  0x38   : > { %v187_v3 = vmul.f32 %v186_v2, %v184_v0  ;;  %v189_v4 = vstv %s314_s28  ;;  %v188_v5 = vmul.f32 %v186_v2, %v185_v1  ;;  %p447_p4 = scmp.ne.s32.totalorder %s445_s29, %s446_s30  ;;  %p452_p3 = scmp.lt.s32.totalorder %s450_s6, %s446_s30 }
  0x39   : > { %v194_v8 = vstv %s315_s5 }
  0x3a   : > { %v190_v6 = vadd.f32 %v189_v4, %v187_v3  ;;  %v191_v7 = vadd.f32 %v189_v4, %v188_v5  ;;  %v197_v11 = vstv %s316_s14  ;;  %p448_p6 = pnand %p447_p4, %p574_p11  ;;  %p453_p5 = por %p452_p3, %p451_p0 }
  0x3c   : > { %v192_v9 = vmax.f32 %v190_v6, 0.0  ;;  %v193_v10 = vmax.f32 %v191_v7, 0.0  ;;  %p449_p13 = pneg %p448_p6 }
  0x3e   : > { %v195_v12 = vmul.f32 %v194_v8, %v192_v9  ;;  %v196_v13 = vmul.f32 %v194_v8, %v193_v10  ;;  %p454_p8 = pnand %p453_p5, %p449_p13 }
  0x40   : > { %v198_v14 = vadd.f32 %v197_v11, %v195_v12  ;;  %v199_v15 = vadd.f32 %v197_v11, %v196_v13 }
  0x42   : > { %200 = vst [vmem:[%s177_s24] sm:$0xff] %v198_v14 }
  0x43   : > { %201 = vst [vmem:[%s177_s24 + $0x8] sm:$0xff] %v199_v15 }
  0x44   : > { %457 = shalt.err (!%p454_p8)
}
  0x45   : > { %s505_s4 = smov 128   ;;  %s506_s23 = smov 8  }
  0x46   : > { %330 = dma.vmem_to_hbm [thread:$0]  (%p574_p11), %s216_s25, 256, %s218_s26, %s203_s13, %s505_s4, %s505_s4, %s506_s23  }
  0x47 PF: > { %s232_s28 = sand.u32 1, %s488_s9   ;;  %p673_p9 = scmp.ge.s32.totalorder %s500_s12, 2 }
  0x48   : > { %s233_s5 = scalar_lea.sflag [#allocation4], %s232_s28 }
  0x49   : > { %p341_p10 = pnand %p673_p9, %p578_p12 }
  0x4b   : > { %p342_p1 = pneg %p341_p10 }
  0x4d   : > { %483 = dma.done.wait (%p342_p1), %s233_s5, 256  }
  0x4e   : > { %485 = vsyncadd (%p342_p1), %s233_s5, 4294967040  ;;  %p16_p2 = scmp.ge.s32.totalorder %s547_s15, 4   ;;  %s674_s9 = smov %s492_s10 }
  0x4f   : > { %s675_s10 = smov %s496_s11  ;;  %s676_s11 = smov %s559_s18 }
  0x50   : > { %s677_s12 = smov %s547_s15  ;;  %18 = sbr.rel (!%p16_p2) target bundleno = 6 (0x6), region = 78 }
  0x55   :  { %239 = vsyncpa [#allocation3], 1 }
  0x56   :  { %241 = vsyncpa [#allocation3 + $0x1], 1 }
  0x57   :  { %242 = vsyncpa [#allocation4], 1 }
  0x58   :  { %244 = vsyncpa [#allocation4 + $0x1], 1 }
  0x59   :  { %245 = vsyncpa [#allocation5], 1 }
  0x5a   :  { %247 = vsyncpa [#allocation5 + $0x1], 1 }

</bundles_post_ra>
